<compile_context>
chip_gen: v7x
topology: tpu7x:2x2x1
jax: 0.10.0
libtpu: 0.0.40
codegen_flags: <defaults>
</compile_context>

<pallas_src>
import jax
import jax.numpy as jnp
from jax.experimental import pallas as pl
from jax.experimental.pallas import tpu as pltpu

_LANE = 128         # lane width: hidden dim padded to this (once, at init)
_SUBLANE = 8        # sublane granularity for the batch tile
_MAX_BATCH_TILE = 1024


def _round_up(x, m):
    return (x + m - 1) // m * m


def mathnet_kernel(x_ref, w1_ref, b1_ref, w2_ref, b2_ref, w3_ref, b3_ref, o_ref):
    x = x_ref[...]                                   # (tb, in) bf16

    # fc1 + relu  (bf16 operands, f32 MXU accumulation)
    h1 = jnp.dot(x, w1_ref[...], preferred_element_type=jnp.float32) + b1_ref[...]
    h1 = jnp.maximum(h1, 0.0).astype(w2_ref.dtype)

    # fc2 + relu
    h2 = jnp.dot(h1, w2_ref[...], preferred_element_type=jnp.float32) + b2_ref[...]
    h2 = jnp.maximum(h2, 0.0).astype(w3_ref.dtype)

    # fc3 (no activation)
    out = jnp.dot(h2, w3_ref[...], preferred_element_type=jnp.float32) + b3_ref[...]
    o_ref[...] = out.astype(o_ref.dtype)


@jax.jit
def mathnet_forward(x, params):
    """x: (B, input_size) f32. params: kernel-ready pytree from prepare_params()."""
    w1, b1 = params["w1"], params["b1"]
    w2, b2 = params["w2"], params["b2"]
    w3, b3 = params["w3"], params["b3"]

    B, in_size = x.shape
    hid_p = w1.shape[1]
    out_size = w3.shape[1]

    # Batch tile: multiple of 8 sublanes, capped at 1024; when the batch is big
    # enough, split into >=2 grid steps so ("parallel",) can engage both v7x TCs.
    b_pad8 = _round_up(max(B, 1), _SUBLANE)
    if b_pad8 >= 2 * _SUBLANE:
        tb = min(_MAX_BATCH_TILE, _round_up(pl.cdiv(b_pad8, 2), _SUBLANE))
    else:
        tb = b_pad8
    b_pad = _round_up(B, tb)

    xp = x.astype(w1.dtype)                          # bf16 activations
    if b_pad != B:
        xp = jnp.pad(xp, ((0, b_pad - B), (0, 0)))   # rows only; sliced off below

    grid = (b_pad // tb,)

    out = pl.pallas_call(
        mathnet_kernel,
        out_shape=jax.ShapeDtypeStruct((b_pad, out_size), jnp.float32),
        grid_spec=pltpu.PrefetchScalarGridSpec(
            num_scalar_prefetch=0,
            grid=grid,
            in_specs=[
                # x: tiled on batch; last dim == full array dim (no lane padding).
                pl.BlockSpec((tb, in_size), lambda i: (i, 0)),
                # weights / biases: constant block index -> VMEM-resident across steps.
                pl.BlockSpec((in_size, hid_p), lambda i: (0, 0)),
                pl.BlockSpec((1, hid_p), lambda i: (0, 0)),
                pl.BlockSpec((hid_p, hid_p), lambda i: (0, 0)),
                pl.BlockSpec((1, hid_p), lambda i: (0, 0)),
                pl.BlockSpec((hid_p, out_size), lambda i: (0, 0)),
                pl.BlockSpec((1, out_size), lambda i: (0, 0)),
            ],
            out_specs=pl.BlockSpec((tb, out_size), lambda i: (i, 0)),
        ),
        compiler_params=pltpu.CompilerParams(
            dimension_semantics=("parallel",),
        ),
    )(xp, w1, b1, w2, b2, w3, b3)

    return out[:B]


def init_params(key, input_size, hidden_size, output_size):
    """Raw params in nn.Linear layout: W (out, in), b (out,), uniform(-1/sqrt(fan_in), ...)."""
    ks = jax.random.split(key, 6)

    def linear(kw, kb, fan_in, fan_out):
        bound = 1.0 / jnp.sqrt(jnp.float32(fan_in))
        w = jax.random.uniform(kw, (fan_out, fan_in), jnp.float32, -bound, bound)
        b = jax.random.uniform(kb, (fan_out,), jnp.float32, -bound, bound)
        return w, b

    return {
        "fc1": linear(ks[0], ks[1], input_size, hidden_size),
        "fc2": linear(ks[2], ks[3], hidden_size, hidden_size),
        "fc3": linear(ks[4], ks[5], hidden_size, hidden_size and output_size),
    }


def prepare_params(raw, compute_dtype=jnp.bfloat16):
    """One-time weight prep (hoisted out of the forward path).

    Transposes (out, in) -> (in, out), zero-pads the hidden dim to a multiple of 128
    (exact: padded hidden columns stay 0 through the ReLUs and contribute 0 downstream),
    casts weights to bf16 for the MXU, and keeps biases in f32 for the f32 add.
    """
    (w1, b1), (w2, b2), (w3, b3) = raw["fc1"], raw["fc2"], raw["fc3"]
    in_size = w1.shape[1]
    hid = w1.shape[0]
    out_size = w3.shape[0]
    hid_p = _round_up(hid, _LANE)

    def pad_t(w, rows, cols):
        wt = jnp.asarray(w).T  # (in, out)
        return jnp.pad(wt, ((0, rows - wt.shape[0]), (0, cols - wt.shape[1])))

    return {
        "w1": pad_t(w1, in_size, hid_p).astype(compute_dtype),
        "b1": jnp.pad(b1, (0, hid_p - hid)).reshape(1, hid_p).astype(jnp.float32),
        "w2": pad_t(w2, hid_p, hid_p).astype(compute_dtype),
        "b2": jnp.pad(b2, (0, hid_p - hid)).reshape(1, hid_p).astype(jnp.float32),
        "w3": pad_t(w3, hid_p, out_size).astype(compute_dtype),
        "b3": b3.reshape(1, out_size).astype(jnp.float32),
    }


if __name__ == "__main__":
    input_size, hidden_size, output_size = 16, 32, 8
    batch = 8

    key = jax.random.PRNGKey(0)
    k_x, k_p = jax.random.split(key)
    x = jax.random.normal(k_x, (batch, input_size), jnp.float32)

    raw = init_params(k_p, input_size, hidden_size, output_size)
    params = prepare_params(raw)          # padding/transpose/cast hoisted out of forward

    out = mathnet_forward(x, params)
    jax.block_until_ready(out)
    assert out.shape == (batch, output_size)

    # Reference mirroring the kernel's bf16 operands / f32 accumulation.
    (rw1, rb1), (rw2, rb2), (rw3, rb3) = raw["fc1"], raw["fc2"], raw["fc3"]
    cd = jnp.bfloat16
    h1 = jnp.maximum(
        jnp.dot(x.astype(cd), rw1.T.astype(cd), preferred_element_type=jnp.float32) + rb1, 0.0)
    h2 = jnp.maximum(
        jnp.dot(h1.astype(cd), rw2.T.astype(cd), preferred_element_type=jnp.float32) + rb2, 0.0)
    ref_bf16 = jnp.dot(h2.astype(cd), rw3.T.astype(cd), preferred_element_type=jnp.float32) + rb3
    assert jnp.allclose(out, ref_bf16, atol=2e-3, rtol=2e-3)

    # Sanity check against the pure-f32 math (loose tolerance for bf16 rounding).
    f1 = jnp.maximum(x @ rw1.T + rb1, 0.0)
    f2 = jnp.maximum(f1 @ rw2.T + rb2, 0.0)
    ref_f32 = f2 @ rw3.T + rb3
    assert jnp.allclose(out, ref_f32, atol=5e-2, rtol=5e-2)

    print("KERNEL_OK")
</pallas_src>

<mosaic_0001>
module attributes {stable_mosaic.version = 11 : i64} {
  func.func @mathnet_kernel(%arg0: i32, %arg1: memref<8x16xbf16, #tpu.memory_space<vmem>>, %arg2: memref<16x128xbf16, #tpu.memory_space<vmem>>, %arg3: memref<1x128xf32, #tpu.memory_space<vmem>>, %arg4: memref<128x128xbf16, #tpu.memory_space<vmem>>, %arg5: memref<1x128xf32, #tpu.memory_space<vmem>>, %arg6: memref<128x8xbf16, #tpu.memory_space<vmem>>, %arg7: memref<1x8xf32, #tpu.memory_space<vmem>>, %arg8: memref<8x8xf32, #tpu.memory_space<vmem>>) attributes {dimension_semantics = [#tpu.dimension_semantics<parallel>], iteration_bounds = array<i64: 1>, scalar_prefetch = 0 : i64, scratch_operands = 0 : i64, tpu.core_type = #tpu.core_type<tc>, window_params = [{transform_indices = @transform_0, window_bounds = array<i64: 8, 16>}, {pipeline_mode = #tpu.pipeline_mode<synchronous>, transform_indices = @transform_1, window_bounds = array<i64: 16, 128>}, {pipeline_mode = #tpu.pipeline_mode<synchronous>, transform_indices = @transform_2, window_bounds = array<i64: 1, 128>}, {pipeline_mode = #tpu.pipeline_mode<synchronous>, transform_indices = @transform_3, window_bounds = array<i64: 128, 128>}, {pipeline_mode = #tpu.pipeline_mode<synchronous>, transform_indices = @transform_4, window_bounds = array<i64: 1, 128>}, {pipeline_mode = #tpu.pipeline_mode<synchronous>, transform_indices = @transform_5, window_bounds = array<i64: 128, 8>}, {pipeline_mode = #tpu.pipeline_mode<synchronous>, transform_indices = @transform_6, window_bounds = array<i64: 1, 8>}, {transform_indices = @transform_7, window_bounds = array<i64: 8, 8>}]} {
    %c0 = arith.constant 0 : index
    %c0_0 = arith.constant 0 : index
    %0 = vector.load %arg1[%c0, %c0_0] : memref<8x16xbf16, #tpu.memory_space<vmem>>, vector<8x16xbf16>
    %c0_1 = arith.constant 0 : index
    %c0_2 = arith.constant 0 : index
    %1 = vector.load %arg2[%c0_1, %c0_2] : memref<16x128xbf16, #tpu.memory_space<vmem>>, vector<16x128xbf16>
    %cst = arith.constant dense<0.000000e+00> : vector<8x128xf32>
    %2 = tpu.matmul %0, %1, %cst {dimension_numbers = #tpu.dot_dimension_numbers<[1], [0], [0], [1], [0, 0, 1, 1], [], []>} : vector<8x16xbf16>, vector<16x128xbf16>, vector<8x128xf32> -> vector<8x128xf32>
    %c0_3 = arith.constant 0 : index
    %c0_4 = arith.constant 0 : index
    %3 = vector.load %arg3[%c0_3, %c0_4] : memref<1x128xf32, #tpu.memory_space<vmem>>, vector<1x128xf32>
    %4 = vector.broadcast %3 : vector<1x128xf32> to vector<8x128xf32>
    %5 = arith.addf %2, %4 : vector<8x128xf32>
    %cst_5 = arith.constant 0.000000e+00 : f32
    %6 = vector.broadcast %cst_5 : f32 to vector<8x128xf32>
    %7 = arith.maximumf %5, %6 : vector<8x128xf32>
    %8 = arith.truncf %7 : vector<8x128xf32> to vector<8x128xbf16>
    %c0_6 = arith.constant 0 : index
    %c0_7 = arith.constant 0 : index
    %9 = vector.load %arg4[%c0_6, %c0_7] : memref<128x128xbf16, #tpu.memory_space<vmem>>, vector<128x128xbf16>
    %cst_8 = arith.constant dense<0.000000e+00> : vector<8x128xf32>
    %10 = tpu.matmul %8, %9, %cst_8 {dimension_numbers = #tpu.dot_dimension_numbers<[1], [0], [0], [1], [0, 0, 1, 1], [], []>} : vector<8x128xbf16>, vector<128x128xbf16>, vector<8x128xf32> -> vector<8x128xf32>
    %c0_9 = arith.constant 0 : index
    %c0_10 = arith.constant 0 : index
    %11 = vector.load %arg5[%c0_9, %c0_10] : memref<1x128xf32, #tpu.memory_space<vmem>>, vector<1x128xf32>
    %12 = vector.broadcast %11 : vector<1x128xf32> to vector<8x128xf32>
    %13 = arith.addf %10, %12 : vector<8x128xf32>
    %cst_11 = arith.constant 0.000000e+00 : f32
    %14 = vector.broadcast %cst_11 : f32 to vector<8x128xf32>
    %15 = arith.maximumf %13, %14 : vector<8x128xf32>
    %16 = arith.truncf %15 : vector<8x128xf32> to vector<8x128xbf16>
    %c0_12 = arith.constant 0 : index
    %c0_13 = arith.constant 0 : index
    %17 = vector.load %arg6[%c0_12, %c0_13] : memref<128x8xbf16, #tpu.memory_space<vmem>>, vector<128x8xbf16>
    %cst_14 = arith.constant dense<0.000000e+00> : vector<8x8xf32>
    %18 = tpu.matmul %16, %17, %cst_14 {dimension_numbers = #tpu.dot_dimension_numbers<[1], [0], [0], [1], [0, 0, 1, 1], [], []>} : vector<8x128xbf16>, vector<128x8xbf16>, vector<8x8xf32> -> vector<8x8xf32>
    %c0_15 = arith.constant 0 : index
    %c0_16 = arith.constant 0 : index
    %19 = vector.load %arg7[%c0_15, %c0_16] : memref<1x8xf32, #tpu.memory_space<vmem>>, vector<1x8xf32>
    %20 = vector.broadcast %19 : vector<1x8xf32> to vector<8x8xf32>
    %21 = arith.addf %18, %20 : vector<8x8xf32>
    %c0_17 = arith.constant 0 : index
    %c0_18 = arith.constant 0 : index
    %22 = vector.load %arg8[%c0_17, %c0_18] : memref<8x8xf32, #tpu.memory_space<vmem>>, vector<8x8xf32>
    tpu.vector_store %arg8[%c0_17, %c0_18], %21 {strides = array<i32>} : memref<8x8xf32, #tpu.memory_space<vmem>>, vector<8x8xf32>,
    return
  }
  func.func @transform_0(%arg0: i32) -> (i32, i32) {
    %c0_i32 = arith.constant 0 : i32
    %c0_i32_0 = arith.constant 0 : i32
    return %arg0, %c0_i32 : i32, i32
  }
  func.func @transform_1(%arg0: i32) -> (i32, i32) {
    %c0_i32 = arith.constant 0 : i32
    %c0_i32_0 = arith.constant 0 : i32
    %c0_i32_1 = arith.constant 0 : i32
    return %c0_i32, %c0_i32_0 : i32, i32
  }
  func.func @transform_2(%arg0: i32) -> (i32, i32) {
    %c0_i32 = arith.constant 0 : i32
    %c0_i32_0 = arith.constant 0 : i32
    %c0_i32_1 = arith.constant 0 : i32
    return %c0_i32, %c0_i32_0 : i32, i32
  }
  func.func @transform_3(%arg0: i32) -> (i32, i32) {
    %c0_i32 = arith.constant 0 : i32
    %c0_i32_0 = arith.constant 0 : i32
    %c0_i32_1 = arith.constant 0 : i32
    return %c0_i32, %c0_i32_0 : i32, i32
  }
  func.func @transform_4(%arg0: i32) -> (i32, i32) {
    %c0_i32 = arith.constant 0 : i32
    %c0_i32_0 = arith.constant 0 : i32
    %c0_i32_1 = arith.constant 0 : i32
    return %c0_i32, %c0_i32_0 : i32, i32
  }
  func.func @transform_5(%arg0: i32) -> (i32, i32) {
    %c0_i32 = arith.constant 0 : i32
    %c0_i32_0 = arith.constant 0 : i32
    %c0_i32_1 = arith.constant 0 : i32
    return %c0_i32, %c0_i32_0 : i32, i32
  }
  func.func @transform_6(%arg0: i32) -> (i32, i32) {
    %c0_i32 = arith.constant 0 : i32
    %c0_i32_0 = arith.constant 0 : i32
    %c0_i32_1 = arith.constant 0 : i32
    return %c0_i32, %c0_i32_0 : i32, i32
  }
  func.func @transform_7(%arg0: i32) -> (i32, i32) {
    %c0_i32 = arith.constant 0 : i32
    %c0_i32_0 = arith.constant 0 : i32
    return %arg0, %c0_i32 : i32, i32
  }
}

</mosaic_0001>

<bundles_post_ra>
// kernel: mathnet_forward.1
= control target key start
LH: loop header
LB: loop body
LE: loop exit
PB: predicated region body
PF: predicated region fallthrough
CT: control target
= control target key end

     0   :  { %v461_v1 = vmov 0.0   ;;  %vm462_vm0 = vmmov 0   ;;  %vm44_vm1 = vcmask 130048   ;;  %s599_s0 = inlined_call_operand.vmem [shape: bf16[8,16], index: 0, kind: input, shape index: {}]   ;;  %s600_s1 = inlined_call_operand.vmem [shape: bf16[16,128], index: 1, kind: input, shape index: {}]   ;;  %s601_s2 = inlined_call_operand.vmem [shape: f32[1,128], index: 2, kind: input, shape index: {}]   ;;  %s602_s3 = inlined_call_operand.vmem [shape: bf16[128,128], index: 3, kind: input, shape index: {}]   ;;  %s603_s4 = inlined_call_operand.vmem [shape: f32[1,128], index: 4, kind: input, shape index: {}]   ;;  %s604_s5 = inlined_call_operand.vmem [shape: bf16[128,8], index: 5, kind: input, shape index: {}]   ;;  %s605_s6 = inlined_call_operand.vmem [shape: f32[1,8], index: 6, kind: input, shape index: {}]   ;;  %s606_s7 = inlined_call_operand.hbm [shape: f32[8,8], index: 7, kind: output, shape index: {}]  }
   0x1   :  { %v420_v0 = vld [vmem:[%s600_s1] sm:$0xff]   ;;  %371 = vmatprep.subr.bf16.mxu0 %v461_v1  ;;  %377 = vmatprep.subr.bf16.mxu1 %v461_v1  ;;  %v422_v4 = vld [vmem:[%s602_s3 + $0x8] sm:$0xff]   ;;  %v423_v5 = vld [vmem:[%s602_s3 + $0x10] sm:$0xff]  }
   0x2   :  { %v28_v2 = vld [vmem:[%s599_s0] sm:$0xf]  ;;  %372 = vmatpush3.bf16.msra.mxu0 %v420_v0  ;;  %373 = vmatprep.mubr.msk.bf16.mxu0 %vm462_vm0, %v461_v1  ;;  %v424_v6 = vld [vmem:[%s602_s3 + $0x18] sm:$0xff]  }
   0x3   :  { %v421_v3 = vld [vmem:[%s602_s3] sm:$0xff]   ;;  %393 = vmatprep.mubr.msk.bf16.mxu1 %vm462_vm0, %v461_v1  ;;  %397 = vmatprep.subr.bf16.mxu0 %v461_v1 }
   0x4   :  { %378 = vmatpush3.bf16.msra.mxu1 %v421_v3 }
   0x5   :  { %374 = vmatmul.mubr.msk.bf16.vlgmr.msra.gmra.mrb[0].mxu0 %vm44_vm1, %v28_v2  ;;  %379 = vmatprep.subr.bf16.mxu1 %v461_v1 }
   0x6   :  { %413 = vmatprep.mubr.msk.bf16.mxu0 %vm462_vm0, %v461_v1 }
   0x8   :  { %380 = vmatpush3.bf16.msra.mxu1 %v422_v4 }
   0x9   :  { %381 = vmatprep.subr.bf16.mxu1 %v461_v1 }
   0xc   :  { %382 = vmatpush3.bf16.msra.mxu1 %v423_v5 }
   0xd   :  { %383 = vmatprep.subr.bf16.mxu1 %v461_v1 }
   0xe   :  { %12 = vsyncpa [#allocation3], 0  ;;  %v425_v7 = vld [vmem:[%s602_s3 + $0x20] sm:$0xff]   ;;  %v426_v8 = vld [vmem:[%s602_s3 + $0x28] sm:$0xff]   ;;  %s463_s14 = smov [#allocation2]   ;;  %vm314_vm2 = vcmask 64512  }
   0xf   :  { %v427_v9 = vld [vmem:[%s602_s3 + $0x30] sm:$0xff]   ;;  %v428_v10 = vld [vmem:[%s602_s3 + $0x38] sm:$0xff]   ;;  %v429_v11 = vld [vmem:[%s604_s5] sm:$0xff]   ;;  %s322_s15 = sshll.u32 %s463_s14, 4  ;;  %s323_s15 = int_to_ptr.vmem [resolvable:$true] %s322_s15 }
  0x10   :  { %384 = vmatpush3.bf16.msra.mxu1 %v424_v6  ;;  %398 = vmatpush3.bf16.msra.mxu0 %v429_v11  ;;  %v430_v12 = vld [vmem:[%s604_s5 + $0x8] sm:$0xff]   ;;  %v431_v13 = vld [vmem:[%s604_s5 + $0x10] sm:$0xff]   ;;  %v432_v14 = vld [vmem:[%s604_s5 + $0x18] sm:$0xff]   ;;  %p442_p1 = scmp.lt.s32.totalorder %s323_s15, %s323_s15 }
  0x11   :  { %385 = vmatprep.subr.bf16.mxu1 %v461_v1  ;;  %399 = vmatprep.subr.bf16.mxu0 %v461_v1  ;;  %v433_v15 = vld [vmem:[%s604_s5 + $0x20] sm:$0xff]   ;;  %v434_v16 = vld [vmem:[%s604_s5 + $0x28] sm:$0xff]   ;;  %v435_v25 = vld [vmem:[%s604_s5 + $0x30] sm:$0xff]  }
  0x12   :  { %v330_v17 = vld [vmem:[%s601_s2] ss:$0 sm:$0xff]  ;;  %v436_v26 = vld [vmem:[%s604_s5 + $0x38] sm:$0xff]  }
  0x13   :  { %v333_v27 = vld [vmem:[%s603_s4] ss:$0 sm:$0xff]  ;;  %s437_s4 = scalar_lea.vmem %s323_s15, 128 }
  0x14   :  { %386 = vmatpush3.bf16.msra.mxu1 %v425_v7  ;;  %400 = vmatpush3.bf16.msra.mxu0 %v430_v12  ;;  %v342_v35 = vld [vmem:[%s605_s6] ss:$0 sm:$0xff]  ;;  %p438_p0 = scmp.ne.s32.totalorder %s323_s15, %s437_s4  ;;  %p443_p2 = scmp.lt.s32.totalorder %s437_s4, %s437_s4 }
  0x15   :  { %387 = vmatprep.subr.bf16.mxu1 %v461_v1  ;;  %401 = vmatprep.subr.bf16.mxu0 %v461_v1 }
  0x16   :  { %p444_p3 = por %p443_p2, %p442_p1 }
  0x18   :  { %388 = vmatpush3.bf16.msra.mxu1 %v426_v8  ;;  %402 = vmatpush3.bf16.msra.mxu0 %v431_v13  ;;  %p445_p4 = pnand %p444_p3, %p438_p0 }
  0x19   :  { %389 = vmatprep.subr.bf16.mxu1 %v461_v1  ;;  %403 = vmatprep.subr.bf16.mxu0 %v461_v1 }
  0x1c   :  { %390 = vmatpush3.bf16.msra.mxu1 %v427_v9  ;;  %404 = vmatpush3.bf16.msra.mxu0 %v432_v14 }
  0x1d   :  { %391 = vmatprep.subr.bf16.mxu1 %v461_v1  ;;  %405 = vmatprep.subr.bf16.mxu0 %v461_v1 }
  0x20   :  { %392 = vmatpush3.bf16.msra.mxu1 %v428_v10  ;;  %406 = vmatpush3.bf16.msra.mxu0 %v433_v15 }
  0x21   :  { %407 = vmatprep.subr.bf16.mxu0 %v461_v1 }
  0x24   :  { %408 = vmatpush3.bf16.msra.mxu0 %v434_v16 }
  0x25   :  { %409 = vmatprep.subr.bf16.mxu0 %v461_v1 }
  0x28   :  { %410 = vmatpush3.bf16.msra.mxu0 %v435_v25 }
  0x29   :  { %411 = vmatprep.subr.bf16.mxu0 %v461_v1 }
  0x2c   :  { %412 = vmatpush3.bf16.msra.mxu0 %v436_v26 }
  0xd8   :  { %v82_v18 = vpop.f32.mrb[0].mxu0 }
  0xd9   :  { %v83_v19 = vadd.f32 %v330_v17, %v82_v18  ;;  %v375_v20 = vpop.f32.mrb[1].mxu0 }
  0xda   :  { %v85_v21 = vpop.f32.mrb[2].mxu0 }
  0xdb   :  { %v88_v22 = vmax.f32 %v83_v19, 0.0  ;;  %v376_v23 = vpop.f32.mrb[3].mxu0 }
  0xdd   :  { %v89_v24 = vpack.c.bf16 %v88_v22, %v88_v22 }
  0xdf   :  { %394 = vmatmul.mubr.bf16.vlgmr.msra.gmra.mrb[0].mxu1 %v89_v24 }
 0x1b2   :  { %v195_v28 = vpop.f32.mrb[0].mxu1 }
 0x1b3   :  { %v196_v29 = vadd.f32 %v333_v27, %v195_v28  ;;  %v395_v30 = vpop.f32.mrb[1].mxu1 }
 0x1b4   :  { %v198_v31 = vpop.f32.mrb[2].mxu1 }
 0x1b5   :  { %v201_v32 = vmax.f32 %v196_v29, 0.0  ;;  %v396_v33 = vpop.f32.mrb[3].mxu1 }
 0x1b7   :  { %v202_v34 = vpack.c.bf16 %v201_v32, %v201_v32 }
 0x1b9   :  { %414 = vmatmul.mubr.bf16.vlgmr.msra.gmra.mrb[4].mxu0 %v202_v34 }
 0x28c   :  { %v308_v36 = vpop.f32.mrb[4].mxu0 }
 0x28d   :  { %v309_v37 = vadd.f32 %v342_v35, %v308_v36  ;;  %v415_v38 = vpop.f32.mrb[5].mxu0 }
 0x28e   :  { %v311_v39 = vpop.f32.mrb[6].mxu0 }
 0x28f   :  { %v416_v40 = vpop.f32.mrb[7].mxu0  ;;  %315 = vst.msk [vmem:[#allocation2] sm:$0xff] %vm314_vm2, %v309_v37 }
 0x290   :  { %448 = shalt.err (!%p445_p4)
}
 0x291   :  { %s449_s6 = scalar_lea.hbm %s606_s7, 128 }
 0x292   :  { %p450_p5 = scmp.ne.s32.totalorder %s606_s7, %s449_s6  ;;  %p453_p6 = scmp.lt.u32.totalorder %s449_s6, %s606_s7 }
 0x294   :  { %p455_p7 = pnand %p453_p6, %p450_p5 }
 0x296   :  { %458 = shalt.err (!%p455_p7)
}
 0x297   :  { %325 = dma.vmem_to_hbm [thread:$0]  %s323_s15, 128, %s606_s7, [#allocation3]  }
 0x298   :  { %459 = dma.done.wait [#allocation3], 128  }
 0x299   :  { %460 = vsyncadd [#allocation3], 4294967168 }
 0x29a   :  { %329 = vsyncpa [#allocation3], 1 }

</bundles_post_ra>
